<compile_context>
chip_gen: v6e
topology: v6e:2x2x1
jax: 0.10.0
libtpu: 0.0.40
codegen_flags: <defaults>
</compile_context>

<pallas_src>
import functools

import jax
import jax.numpy as jnp
from jax.experimental import pallas as pl
from jax.experimental.pallas import tpu as pltpu

LANE = 128
SUBLANE = 8


def _cdiv(a, b):
    return -(-a // b)


def _round_up(x, m):
    return _cdiv(x, m) * m


def _device_kind():
    try:
        return jax.devices()[0].device_kind.lower()
    except Exception:
        return ""


def _is_v7x(kind):
    return ("v7" in kind) or ("7x" in kind)


def _target_block_bytes(kind):
    # Constant-byte blocks per input per step.
    if _is_v7x(kind):
        return 2 << 20      # ~3.2 TB/s HBM: amortize ~0.35us/step overhead
    if "v6" in kind:
        return 1 << 20
    return 512 << 10        # v5e & unknown: well inside 16 MiB scoped VMEM


def _l1_sum_kernel(a_ref, b_ref, out_ref, acc_ref, *,
                   block_rows, tiles_per_core, valid_rows,
                   first_masked_tile, needs_mask):
    """Accumulate sum(|a - b|) for one core-split into a (1, 1) SMEM partial."""
    c = pl.program_id(0)   # core-split index (CORE_PARALLEL on v7x, size 1 else)
    i = pl.program_id(1)   # "arbitrary" tile index within the split

    @pl.when(i == 0)
    def _init():
        acc_ref[...] = jnp.zeros_like(acc_ref)

    logical_tile = c * tiles_per_core + i   # scalar

    def accumulate(masked):
        diff = jnp.abs(a_ref[...].astype(jnp.float32)
                       - b_ref[...].astype(jnp.float32))
        if masked:
            # Row-granular mask against a scalar threshold: one compare +
            # select per vreg.  thresh <= 0 zeroes a fully-duplicated tile
            # (clamped index_map); 0 < thresh < block_rows handles the tail.
            thresh = valid_rows - logical_tile * block_rows
            row = jax.lax.broadcasted_iota(jnp.int32, diff.shape, 0)
            diff = jnp.where(row < thresh, diff, 0.0)
        # Fold the block into a single-vreg (8, 128) accumulator.  The
        # reshape groups whole (8, 128) vregs; the sum over axis 0 is pure
        # VPU (no lane/sublane crossing).
        acc_ref[...] += diff.reshape(-1, SUBLANE, LANE).sum(axis=0)

    if needs_mask:
        is_tail = logical_tile >= first_masked_tile

        @pl.when(is_tail)
        def _masked():
            accumulate(masked=True)

        @pl.when(jnp.logical_not(is_tail))
        def _unmasked():
            accumulate(masked=False)
    else:
        accumulate(masked=False)

    @pl.when(i == pl.num_programs(1) - 1)
    def _finalize():
        out_ref[0, 0] = jnp.sum(acc_ref[...])


def cycle_consistency_loss(real_image, reconstructed_image, lambda_cycle=10.0):
    assert real_image.shape == reconstructed_image.shape
    n_elem = real_image.size

    # Flatten in native dtype (no wrapper-level f32 copy).
    a = real_image.reshape(-1)
    b = reconstructed_image.reshape(-1)

    # Pad only to the 128-lane width (never triggers for the usual
    # power-of-two image shapes); padding contributes |0-0| = 0 and the mean
    # divides by the true n_elem.
    # TODO(synk): the rare non-multiple-of-128 case still materializes a copy;
    # if removed, the in-kernel mask must become element-granular.
    lane_pad = (-n_elem) % LANE
    if lane_pad:
        a = jnp.concatenate([a, jnp.zeros((lane_pad,), a.dtype)])
        b = jnp.concatenate([b, jnp.zeros((lane_pad,), b.dtype)])

    rows = a.size // LANE
    a2 = a.reshape(rows, LANE)
    b2 = b.reshape(rows, LANE)

    kind = _device_kind()
    itemsize = jnp.dtype(a.dtype).itemsize
    # Byte-based block sizing (f32 -> 1024/2048/4096 rows, bf16 -> 2x rows).
    max_block_rows = max(
        SUBLANE,
        (_target_block_bytes(kind) // (LANE * itemsize)) // SUBLANE * SUBLANE)
    block_rows = min(max_block_rows, _round_up(rows, SUBLANE))
    total_tiles = _cdiv(rows, block_rows)

    # Core split only where it actually shards across TensorCores (v7x, via
    # CORE_PARALLEL) and there is more than one tile of work.  On 1-TC chips
    # the split would only serialize the grid and force masked duplicate tiles.
    num_core_splits = 2 if (_is_v7x(kind) and total_tiles >= 2) else 1
    tiles_per_core = _cdiv(total_tiles, num_core_splits)
    max_tile = total_tiles - 1

    # First logical tile that needs masking (partial tail, or anything beyond
    # the real tile count when the core split duplicates a clamped tile).
    first_masked_tile = rows // block_rows
    needs_mask = num_core_splits * tiles_per_core > first_masked_tile

    def tile_index_map(c, i):
        # Clamp so no DMA targets a fully out-of-range block; the in-kernel
        # mask (keyed on the logical tile) zeroes any duplicated work.
        t = jnp.minimum(c * tiles_per_core + i, max_tile)
        return (t, 0)

    kernel = functools.partial(
        _l1_sum_kernel,
        block_rows=block_rows,
        tiles_per_core=tiles_per_core,
        valid_rows=rows,
        first_masked_tile=first_masked_tile,
        needs_mask=needs_mask,
    )

    core_sem = pltpu.CORE_PARALLEL if num_core_splits > 1 else pltpu.ARBITRARY

    partials = pl.pallas_call(
        kernel,
        out_shape=jax.ShapeDtypeStruct((num_core_splits, 1), jnp.float32),
        grid_spec=pltpu.PrefetchScalarGridSpec(
            num_scalar_prefetch=0,
            grid=(num_core_splits, tiles_per_core),
            in_specs=[
                pl.BlockSpec((block_rows, LANE), tile_index_map),
                pl.BlockSpec((block_rows, LANE), tile_index_map),
            ],
            out_specs=pl.BlockSpec(
                (1, 1), lambda c, i: (c, 0), memory_space=pltpu.SMEM
            ),
            scratch_shapes=[pltpu.VMEM((SUBLANE, LANE), jnp.float32)],
        ),
        compiler_params=pltpu.CompilerParams(
            dimension_semantics=(core_sem, pltpu.ARBITRARY),
            # Generous explicit scoped-VMEM limit; actual use is
            # 2 inputs x 2 buffers x block (<= 8 MiB on v7x) + one vreg acc.
            vmem_limit_bytes=32 << 20,
        ),
    )(a2, b2)

    total = jnp.sum(partials)
    mean_abs = total / jnp.float32(n_elem)
    return jnp.float32(lambda_cycle) * mean_abs


if __name__ == "__main__":
    key = jax.random.PRNGKey(0)
    k1, k2, k3, k4 = jax.random.split(key, 4)

    # Small NCHW images, like the PyTorch module's typical inputs.
    real = jax.random.normal(k1, (2, 4, 16, 16), dtype=jnp.float32)
    recon = jax.random.normal(k2, (2, 4, 16, 16), dtype=jnp.float32)

    loss = cycle_consistency_loss(real, recon, lambda_cycle=10.0)
    loss = jax.block_until_ready(loss)

    # Reference check (pure JAX): L1Loss(mean) * lambda_cycle.
    ref = 10.0 * jnp.mean(jnp.abs(real - recon))
    assert jnp.allclose(loss, ref, rtol=1e-5, atol=1e-5), (loss, ref)

    # Second check: non-aligned shape exercises the gated tail-mask path
    # (lane pad + partial last block).
    real2 = jax.random.normal(k3, (2, 3, 20, 20), dtype=jnp.float32)
    recon2 = jax.random.normal(k4, (2, 3, 20, 20), dtype=jnp.float32)
    loss2 = jax.block_until_ready(
        cycle_consistency_loss(real2, recon2, lambda_cycle=10.0))
    ref2 = 10.0 * jnp.mean(jnp.abs(real2 - recon2))
    assert jnp.allclose(loss2, ref2, rtol=1e-5, atol=1e-5), (loss2, ref2)

    print("KERNEL_OK")
</pallas_src>

<mosaic_0001>
module attributes {stable_mosaic.version = 11 : i64} {
  func.func @_l1_sum_kernel(%arg0: i32, %arg1: i32, %arg2: memref<16x128xf32, #tpu.memory_space<vmem>>, %arg3: memref<16x128xf32, #tpu.memory_space<vmem>>, %arg4: memref<1x1xf32, #tpu.memory_space<smem>>, %arg5: memref<8x128xf32, #tpu.memory_space<vmem>>) attributes {dimension_semantics = [#tpu.dimension_semantics<arbitrary>, #tpu.dimension_semantics<arbitrary>], iteration_bounds = array<i64: 1, 1>, scalar_prefetch = 0 : i64, scratch_operands = 1 : i64, tpu.core_type = #tpu.core_type<tc>, window_params = [{transform_indices = @transform_0, window_bounds = array<i64: 16, 128>}, {transform_indices = @transform_1, window_bounds = array<i64: 16, 128>}, {transform_indices = @transform_2, window_bounds = array<i64: 1, 1>}]} {
    %c0_i32 = arith.constant 0 : i32
    %0 = arith.cmpi eq, %arg1, %c0_i32 : i32
    %1 = arith.extui %0 : i1 to i32
    %c0_i32_0 = arith.constant 0 : i32
    %2 = arith.cmpi ne, %1, %c0_i32_0 : i32
    scf.if %2 {
      %cst_10 = arith.constant 0.000000e+00 : f32
      %15 = vector.broadcast %cst_10 : f32 to vector<8x128xf32>
      %c0_11 = arith.constant 0 : index
      %c0_12 = arith.constant 0 : index
      %16 = vector.load %arg5[%c0_11, %c0_12] : memref<8x128xf32, #tpu.memory_space<vmem>>, vector<8x128xf32>
      tpu.vector_store %arg5[%c0_11, %c0_12], %15 {strides = array<i32>} : memref<8x128xf32, #tpu.memory_space<vmem>>, vector<8x128xf32>,
    } else {
    }
    %c0 = arith.constant 0 : index
    %c0_1 = arith.constant 0 : index
    %3 = vector.load %arg2[%c0, %c0_1] : memref<16x128xf32, #tpu.memory_space<vmem>>, vector<16x128xf32>
    %c0_2 = arith.constant 0 : index
    %c0_3 = arith.constant 0 : index
    %4 = vector.load %arg3[%c0_2, %c0_3] : memref<16x128xf32, #tpu.memory_space<vmem>>, vector<16x128xf32>
    %5 = arith.subf %3, %4 : vector<16x128xf32>
    %6 = math.absf %5 : vector<16x128xf32>
    %c0_4 = arith.constant 0 : index
    %c0_5 = arith.constant 0 : index
    %7 = vector.load %arg5[%c0_4, %c0_5] : memref<8x128xf32, #tpu.memory_space<vmem>>, vector<8x128xf32>
    %8 = vector.shape_cast %6 : vector<16x128xf32> to vector<2x8x128xf32>
    %cst = arith.constant dense<0.000000e+00> : vector<8x128xf32>
    %9 = vector.multi_reduction <add>, %8, %cst [0] : vector<2x8x128xf32> to vector<8x128xf32>
    %10 = arith.addf %7, %9 : vector<8x128xf32>
    %c0_6 = arith.constant 0 : index
    %c0_7 = arith.constant 0 : index
    %11 = vector.load %arg5[%c0_6, %c0_7] : memref<8x128xf32, #tpu.memory_space<vmem>>, vector<8x128xf32>
    tpu.vector_store %arg5[%c0_6, %c0_7], %10 {strides = array<i32>} : memref<8x128xf32, #tpu.memory_space<vmem>>, vector<8x128xf32>,
    %c0_i32_8 = arith.constant 0 : i32
    %12 = arith.cmpi eq, %arg1, %c0_i32_8 : i32
    %13 = arith.extui %12 : i1 to i32
    %c0_i32_9 = arith.constant 0 : i32
    %14 = arith.cmpi ne, %13, %c0_i32_9 : i32
    scf.if %14 {
      %c0_10 = arith.constant 0 : index
      %c0_11 = arith.constant 0 : index
      %15 = vector.load %arg5[%c0_10, %c0_11] : memref<8x128xf32, #tpu.memory_space<vmem>>, vector<8x128xf32>
      %16 = vector.shape_cast %15 : vector<8x128xf32> to vector<1x8x128xf32>
      %cst_12 = arith.constant dense<0.000000e+00> : vector<1xf32>
      %17 = vector.multi_reduction <add>, %16, %cst_12 [1, 2] : vector<1x8x128xf32> to vector<1xf32>
      %18 = vector.shape_cast %17 : vector<1xf32> to vector<1x1x1xf32>
      %19 = vector.extract %18[0, 0, 0] : f32 from vector<1x1x1xf32>
      %c0_13 = arith.constant 0 : index
      %c0_14 = arith.constant 0 : index
      %20 = memref.load %arg4[%c0_13, %c0_14] : memref<1x1xf32, #tpu.memory_space<smem>>
      memref.store %19, %arg4[%c0_13, %c0_14] : memref<1x1xf32, #tpu.memory_space<smem>>
    } else {
    }
    return
  }
  func.func @transform_0(%arg0: i32, %arg1: i32) -> (i32, i32) {
    %c1_i32 = arith.constant 1 : i32
    %0 = arith.muli %arg0, %c1_i32 : i32
    %1 = arith.addi %0, %arg1 : i32
    %c0_i32 = arith.constant 0 : i32
    %2 = arith.minsi %1, %c0_i32 : i32
    %c0_i32_0 = arith.constant 0 : i32
    %c0_i32_1 = arith.constant 0 : i32
    return %2, %c0_i32_0 : i32, i32
  }
  func.func @transform_1(%arg0: i32, %arg1: i32) -> (i32, i32) {
    %c1_i32 = arith.constant 1 : i32
    %0 = arith.muli %arg0, %c1_i32 : i32
    %1 = arith.addi %0, %arg1 : i32
    %c0_i32 = arith.constant 0 : i32
    %2 = arith.minsi %1, %c0_i32 : i32
    %c0_i32_0 = arith.constant 0 : i32
    %c0_i32_1 = arith.constant 0 : i32
    return %2, %c0_i32_0 : i32, i32
  }
  func.func @transform_2(%arg0: i32, %arg1: i32) -> (i32, i32) {
    %c0_i32 = arith.constant 0 : i32
    %c0_i32_0 = arith.constant 0 : i32
    return %arg0, %c0_i32 : i32, i32
  }
}

</mosaic_0001>

<bundles_post_ra>
// kernel: tpu_custom_call.1
= control target key start
LH: loop header
LB: loop body
LE: loop exit
PB: predicated region body
PF: predicated region fallthrough
CT: control target
= control target key end

     0   :  { %7 = vsyncpa [#allocation4], 0  ;;  %s201_s0 = inlined_call_operand.hbm [shape: f32[16,128], index: 0, kind: input, shape index: {}]   ;;  %s202_s1 = inlined_call_operand.hbm [shape: f32[16,128], index: 1, kind: input, shape index: {}]   ;;  %s203_s2 = inlined_call_operand.hbm [shape: f32[1,1], index: 2, kind: output, shape index: {}]  }
   0x1   :  { %8 = vsyncpa [#allocation7], 0 }
   0x2   :  { %9 = vsyncpa [#allocation5], 0  ;;  %s172_s9 = smov [#allocation3]  }
   0x3   :  { %s21_s10 = sshll.u32 %s172_s9, 4  ;;  %s22_s10 = int_to_ptr.vmem [resolvable:$true] %s21_s10 }
   0x4   :  { %s126_s11 = scalar_lea.vmem %s22_s10, 256  ;;  %p131_p1 = scmp.lt.s32.totalorder %s22_s10, %s22_s10 }
   0x5   :  { %p127_p0 = scmp.ne.s32.totalorder %s22_s10, %s126_s11  ;;  %p132_p2 = scmp.lt.s32.totalorder %s126_s11, %s126_s11 }
   0x7   :  { %p133_p3 = por %p132_p2, %p131_p1 }
   0x9   :  { %p134_p4 = pnand %p133_p3, %p127_p0 }
   0xb   :  { %137 = shalt.err (!%p134_p4)
}
   0xc   :  { %s173_s12 = smov 128   ;;  %s174_s13 = smov 8  }
   0xd   :  { %27 = dma.hbm_to_vmem [thread:$0]  %s201_s0, 256, %s22_s10, [#allocation4], %s173_s12, %s173_s12, %s174_s13  }
   0xe   :  { %s175_s16 = smov [#allocation6]  }
   0xf   :  { %s39_s17 = sshll.u32 %s175_s16, 4  ;;  %s40_s17 = int_to_ptr.vmem [resolvable:$true] %s39_s17 }
  0x10   :  { %s146_s18 = scalar_lea.vmem %s40_s17, 256  ;;  %p151_p6 = scmp.lt.s32.totalorder %s40_s17, %s40_s17 }
  0x11   :  { %p147_p5 = scmp.ne.s32.totalorder %s40_s17, %s146_s18  ;;  %p152_p7 = scmp.lt.s32.totalorder %s146_s18, %s146_s18 }
  0x13   :  { %p153_p8 = por %p152_p7, %p151_p6 }
  0x15   :  { %p154_p9 = pnand %p153_p8, %p147_p5 }
  0x17   :  { %157 = shalt.err (!%p154_p9)
}
  0x18   :  { %45 = dma.hbm_to_vmem [thread:$0]  %s202_s1, 256, %s40_s17, [#allocation7], %s173_s12, %s173_s12, %s174_s13  }
  0x19   :  { %166 = dma.done.wait [#allocation4], 256  }
  0x1a   :  { %167 = vsyncadd [#allocation4], 4294967040 }
  0x1b   :  { %168 = dma.done.wait [#allocation7], 256  }
  0x1c   :  { %169 = vsyncadd [#allocation7], 4294967040  ;;  %v65_v0 = vld [vmem:[#allocation3] sm:$0xff]  ;;  %v66_v1 = vld [vmem:[#allocation3 + $0x8] sm:$0xff]  ;;  %s176_s1 = smov [#allocation8]  }
  0x1d   :  { %v67_v2 = vld [vmem:[#allocation6] sm:$0xff]  ;;  %v68_v3 = vld [vmem:[#allocation6 + $0x8] sm:$0xff] }
  0x1e   :  { %v69_v4 = vsub.f32 %v65_v0, %v67_v2  ;;  %v70_v5 = vsub.f32 %v66_v1, %v68_v3 }
  0x20   :  { %v71_v6 = vand.u32 2147483647, %v69_v4  ;;  %v72_v7 = vand.u32 2147483647, %v70_v5 }
  0x22   :  { %v74_v8 = vadd.f32 %v72_v7, %v71_v6 }
  0x24   :  { %81 = vadd.xlane.f32.xlu0 %v74_v8 }
  0xad   :  { %v82_v9 = vpop.xlane.xlu0 %81 }
  0xae   :  { %v83_v10 = vrot.slane %v82_v9, 4 }
  0xb0   :  { %v84_v11 = vadd.f32 %v83_v10, %v82_v9 }
  0xb2   :  { %v85_v12 = vrot.slane %v84_v11, 2 }
  0xb4   :  { %v86_v13 = vadd.f32 %v85_v12, %v84_v11 }
  0xb6   :  { %v87_v14 = vrot.slane %v86_v13, 1 }
  0xb8   :  { %v88_v15 = vadd.f32 %v87_v14, %v86_v13 }
  0xba   :  { %111 = vpush %v88_v15 }
  0xeb   :  { %s112_s0 = spop %111 }
  0xec   :  { %91 = sst [smem:[#allocation8]] %s112_s0 }
  0xed   :  { %99 = dma.smem_to_hbm %s176_s1, 16, %s203_s2, [#allocation5]  }
  0xee   :  { %170 = dma.done.wait [#allocation5], 16  }
  0xef   :  { %171 = vsyncadd [#allocation5], 4294967280 }
  0xf0   :  { %103 = sfence }
  0xf1   :  { %104 = vsyncpa [#allocation4], 1 }
  0xf2   :  { %105 = vsyncpa [#allocation7], 1 }
  0xf3   :  { %106 = vsyncpa [#allocation5], 1 }

</bundles_post_ra>
